<compile_context>
chip_gen: v7x
topology: tpu7x:2x2x1
jax: 0.10.0
libtpu: 0.0.40
codegen_flags: <defaults>
</compile_context>

<pallas_src>
import jax
import jax.numpy as jnp
from jax.experimental import pallas as pl
from jax.experimental.pallas import tpu as pltpu


def _round_up(x, m):
    return ((x + m - 1) // m) * m


def _pick_tile(padded, granularity, max_tile):
    """Largest multiple of `granularity` that divides `padded` and is <= max_tile."""
    k = padded // granularity
    max_d = min(k, max(max_tile // granularity, 1))
    for d in range(max_d, 0, -1):
        if k % d == 0:
            return d * granularity
    return granularity


def _rbf_kernel(lhs_ref, rhs_ref, o_ref):
    # lhs_ref: (TN, D+2) tile of [2s*X, -s*||x||^2, 1]
    # rhs_ref: (D+2, TM) tile of [X'^T ; 1 ; -s*||x'||^2]
    # o_ref:   (TN, TM) output tile
    # MXU produces the exponent directly; distances are non-negative so the
    # true exponent is <= 0 — clamp fp round-off / cancellation.
    expo = jnp.dot(lhs_ref[...], rhs_ref[...],
                   preferred_element_type=jnp.float32)
    expo = jnp.minimum(expo, 0.0)
    o_ref[...] = jnp.exp(expo).astype(o_ref.dtype)


def rbf_kernel_pallas(X, X_prime, length_scale=1.0, kernel_mode="fixed",
                      kernel_params=None, tile_n=512, tile_m=1024,
                      out_dtype=jnp.float32):
    """Pallas implementation of RBFKernel.forward."""
    # --- parameter glue (mirrors the PyTorch module's __init__/forward) ---
    if kernel_mode == "predicted":
        log_length_scale = jnp.asarray(kernel_params, dtype=jnp.float32)
    else:  # 'fixed' or 'learned'
        log_ls = jnp.log(jnp.asarray(float(length_scale), dtype=jnp.float32))
        log_length_scale = jnp.clip(log_ls,
                                    jnp.log(jnp.float32(1.0)),
                                    jnp.log(jnp.float32(2.0)))
    ls = jnp.exp(log_length_scale)
    scale = (1.0 / (2.0 * ls * ls)).astype(jnp.float32)   # s = 1/(2*ls^2)

    X = jnp.asarray(X, jnp.float32)
    X_prime = jnp.asarray(X_prime, jnp.float32)
    N, D = X.shape
    M, Dp = X_prime.shape
    assert D == Dp, "feature dims must match"

    # Pad only to hardware alignment (N -> 8, M -> 128); tiles are chosen as
    # divisors of the padded extents so the grid covers exactly, with no
    # whole-tile padding waste.
    N_pad = _round_up(N, 8)
    M_pad = _round_up(M, 128)
    tn = _pick_tile(N_pad, 8, max(tile_n, 8))
    tm = _pick_tile(M_pad, 128, max(tile_m, 128))

    Xp = jnp.pad(X, ((0, N_pad - N), (0, 0))) if N_pad != N else X
    XPp = (jnp.pad(X_prime, ((0, M_pad - M), (0, 0)))
           if M_pad != M else X_prime)

    # Fold scale + rank-1 norm terms into augmented matmul operands (plain
    # JAX, O(N*D + M*D) work).  Padded rows/cols yield exponent <= 0 -> safe.
    x_sq = jnp.sum(Xp * Xp, axis=-1, keepdims=True)        # (N_pad, 1)
    xp_sq = jnp.sum(XPp * XPp, axis=-1)[None, :]            # (1, M_pad)
    ones_n = jnp.ones((N_pad, 1), jnp.float32)
    ones_m = jnp.ones((1, M_pad), jnp.float32)
    lhs = jnp.concatenate([Xp * (2.0 * scale), -scale * x_sq, ones_n],
                          axis=-1)                           # (N_pad, D+2)
    rhs = jnp.concatenate([XPp.T, ones_m, -scale * xp_sq],
                          axis=0)                            # (D+2, M_pad)
    Dp2 = D + 2

    grid = (N_pad // tn, M_pad // tm)

    out_bytes = jnp.dtype(out_dtype).itemsize
    # Double-buffered per-array footprint + headroom for semaphores/metadata.
    vmem_need = 2 * (tn * Dp2 * 4 + Dp2 * tm * 4 + tn * tm * out_bytes)
    vmem_limit = int(min(max(2 * vmem_need, 32 * 1024 * 1024),
                         48 * 1024 * 1024))

    cost = pl.CostEstimate(
        flops=2 * N_pad * M_pad * Dp2,
        transcendentals=N_pad * M_pad,
        bytes_accessed=(4 * (N_pad * Dp2 + Dp2 * M_pad)
                        + out_bytes * N_pad * M_pad),
    )

    out = pl.pallas_call(
        _rbf_kernel,
        out_shape=jax.ShapeDtypeStruct((N_pad, M_pad), out_dtype),
        grid=grid,
        in_specs=[
            pl.BlockSpec((tn, Dp2), lambda i, j: (i, 0)),   # augmented X tile
            pl.BlockSpec((Dp2, tm), lambda i, j: (0, j)),   # augmented X'^T tile
        ],
        out_specs=pl.BlockSpec((tn, tm), lambda i, j: (i, j)),
        compiler_params=pltpu.CompilerParams(
            dimension_semantics=("parallel", "parallel"),
            vmem_limit_bytes=vmem_limit,
        ),
        cost_estimate=cost,
    )(lhs, rhs)

    if N_pad != N or M_pad != M:
        out = out[:N, :M]
    return out


def _rbf_reference(X, X_prime, length_scale=1.0):
    # Pure-JAX reference mirroring torch semantics (cdist ** 2 then exp).
    log_ls = jnp.clip(jnp.log(jnp.float32(length_scale)),
                      jnp.log(jnp.float32(1.0)), jnp.log(jnp.float32(2.0)))
    ls = jnp.exp(log_ls)
    diff = X[:, None, :] - X_prime[None, :, :]
    dist_sq = jnp.sum(diff * diff, axis=-1)
    return jnp.exp(-dist_sq / (2.0 * ls * ls))


if __name__ == "__main__":
    key = jax.random.PRNGKey(0)
    kx, kp = jax.random.split(key)
    N, M, D = 128, 96, 8          # small synthetic point clouds
    X = jax.random.normal(kx, (N, D), dtype=jnp.float32)
    X_prime = jax.random.normal(kp, (M, D), dtype=jnp.float32)

    K = rbf_kernel_pallas(X, X_prime, length_scale=1.0, kernel_mode="fixed")
    K = jax.block_until_ready(K)

    K_ref = _rbf_reference(X, X_prime, length_scale=1.0)
    assert K.shape == (N, M)
    assert jnp.allclose(K, K_ref, atol=1e-4, rtol=1e-4), "mismatch vs reference"

    # Non-aligned, multi-tile path: N only padded to 8, M only padded to 128,
    # tiles chosen as divisors of the padded extents (no whole-tile rounding).
    N2, M2 = 200, 260
    X2 = jax.random.normal(kx, (N2, D), dtype=jnp.float32)
    XP2 = jax.random.normal(kp, (M2, D), dtype=jnp.float32)
    K2 = jax.block_until_ready(
        rbf_kernel_pallas(X2, XP2, length_scale=1.5, kernel_mode="fixed",
                          tile_n=64, tile_m=128))
    K2_ref = _rbf_reference(X2, XP2, length_scale=1.5)
    assert K2.shape == (N2, M2)
    assert jnp.allclose(K2, K2_ref, atol=1e-4, rtol=1e-4), "mismatch (padded case)"

    # 'predicted' mode + bf16 writeback path (looser tolerance).
    K3 = jax.block_until_ready(
        rbf_kernel_pallas(X, X_prime, kernel_mode="predicted",
                          kernel_params=0.1, out_dtype=jnp.bfloat16))
    ls3 = jnp.exp(jnp.float32(0.1))
    d3 = jnp.sum((X[:, None, :] - X_prime[None, :, :]) ** 2, axis=-1)
    K3_ref = jnp.exp(-d3 / (2.0 * ls3 * ls3))
    assert jnp.allclose(K3.astype(jnp.float32), K3_ref, atol=2e-2, rtol=2e-2)

    print("KERNEL_OK")
</pallas_src>

<mosaic_0001>
module attributes {stable_mosaic.version = 11 : i64} {
  func.func @_rbf_kernel(%arg0: i32, %arg1: i32, %arg2: memref<128x10xf32, #tpu.memory_space<vmem>>, %arg3: memref<10x128xf32, #tpu.memory_space<vmem>>, %arg4: memref<128x128xf32, #tpu.memory_space<vmem>>) attributes {dimension_semantics = [#tpu.dimension_semantics<parallel>, #tpu.dimension_semantics<parallel>], iteration_bounds = array<i64: 1, 1>, scalar_prefetch = 0 : i64, scratch_operands = 0 : i64, tpu.core_type = #tpu.core_type<tc>, window_params = [{transform_indices = @transform_0, window_bounds = array<i64: 128, 10>}, {transform_indices = @transform_1, window_bounds = array<i64: 10, 128>}, {transform_indices = @transform_2, window_bounds = array<i64: 128, 128>}]} {
    %c0 = arith.constant 0 : index
    %c0_0 = arith.constant 0 : index
    %0 = vector.load %arg2[%c0, %c0_0] : memref<128x10xf32, #tpu.memory_space<vmem>>, vector<128x10xf32>
    %c0_1 = arith.constant 0 : index
    %c0_2 = arith.constant 0 : index
    %1 = vector.load %arg3[%c0_1, %c0_2] : memref<10x128xf32, #tpu.memory_space<vmem>>, vector<10x128xf32>
    %cst = arith.constant dense<0.000000e+00> : vector<128x128xf32>
    %2 = tpu.matmul %0, %1, %cst {dimension_numbers = #tpu.dot_dimension_numbers<[1], [0], [0], [1], [0, 0, 1, 1], [], []>} : vector<128x10xf32>, vector<10x128xf32>, vector<128x128xf32> -> vector<128x128xf32>
    %cst_3 = arith.constant 0.000000e+00 : f32
    %3 = vector.broadcast %cst_3 : f32 to vector<128x128xf32>
    %4 = arith.minimumf %2, %3 : vector<128x128xf32>
    %5 = math.exp %4 : vector<128x128xf32>
    %c0_4 = arith.constant 0 : index
    %c0_5 = arith.constant 0 : index
    %6 = vector.load %arg4[%c0_4, %c0_5] : memref<128x128xf32, #tpu.memory_space<vmem>>, vector<128x128xf32>
    tpu.vector_store %arg4[%c0_4, %c0_5], %5 {strides = array<i32>} : memref<128x128xf32, #tpu.memory_space<vmem>>, vector<128x128xf32>,
    return
  }
  func.func @transform_0(%arg0: i32, %arg1: i32) -> (i32, i32) {
    %c0_i32 = arith.constant 0 : i32
    %c0_i32_0 = arith.constant 0 : i32
    return %arg0, %c0_i32 : i32, i32
  }
  func.func @transform_1(%arg0: i32, %arg1: i32) -> (i32, i32) {
    %c0_i32 = arith.constant 0 : i32
    %c0_i32_0 = arith.constant 0 : i32
    return %c0_i32, %arg1 : i32, i32
  }
  func.func @transform_2(%arg0: i32, %arg1: i32) -> (i32, i32) {
    %c0_i32 = arith.constant 0 : i32
    return %arg0, %arg1 : i32, i32
  }
}

</mosaic_0001>

<bundles_post_ra>
// kernel: tpu_custom_call.1
= control target key start
LH: loop header
LB: loop body
LE: loop exit
PB: predicated region body
PF: predicated region fallthrough
CT: control target
= control target key end

     0   :  { %vm79_vm0 = vcmask 1041408   ;;  %vm439_vm1 = vmmov 1   ;;  %vm30_vm3 = vcmask 80896   ;;  %s540_s0 = inlined_call_operand.vmem [shape: f32[128,10], index: 0, kind: input, shape index: {}]   ;;  %s541_s1 = inlined_call_operand.vmem [shape: f32[10,128], index: 1, kind: input, shape index: {}]   ;;  %s542_s2 = inlined_call_operand.hbm [shape: f32[128,128], index: 2, kind: output, shape index: {}]  }
   0x1   :  { %v28_v0 = vld [vmem:[%s541_s1] sm:$0xff]  ;;  %v29_v1 = vld [vmem:[%s541_s1 + $0x8] sm:$0x3]  ;;  %vm372_vm2 = vmpackc.low %vm79_vm0, %vm439_vm1 }
   0x2   :  { %v12_v2 = vld [vmem:[%s540_s0] sm:$0xff]  ;;  %v371_v3 = vpack.c.bf16 %v29_v1, %v28_v0  ;;  %v13_v5 = vld [vmem:[%s540_s0 + $0x8] sm:$0xff]  ;;  %v14_v7 = vld [vmem:[%s540_s0 + $0x10] sm:$0xff] }
   0x3   :  { %v20_v4 = vld [vmem:[%s540_s0 + $0x40] sm:$0xff]  ;;  %347 = vmatprep.mubr.msk.f32.mxu0 %vm30_vm3, %v12_v2  ;;  %v21_v6 = vld [vmem:[%s540_s0 + $0x48] sm:$0xff]  ;;  %v22_v8 = vld [vmem:[%s540_s0 + $0x50] sm:$0xff] }
   0x4   :  { %359 = vmatprep.mubr.msk.f32.mxu1 %vm30_vm3, %v20_v4  ;;  %373 = vmatprep.subr.msk.bf16.mxu0 %vm372_vm2, %v371_v3 }
   0x5   :  { %377 = vmatprep.subr.msk.bf16.mxu1 %vm372_vm2, %v371_v3  ;;  %376 = vmatpush3.bf16.msk.msra.mxu0 %vm372_vm2, %v371_v3 }
   0x6   :  { %378 = vmatpush3.bf16.msk.msra.mxu1 %vm372_vm2, %v371_v3 }
   0x7   :  { %7 = vsyncpa [#allocation3], 0  ;;  %v15_v9 = vld [vmem:[%s540_s0 + $0x18] sm:$0xff]  ;;  %v16_v11 = vld [vmem:[%s540_s0 + $0x20] sm:$0xff] }
   0x8   :  { %348 = vmatmul.mubr.msk.f32.vlgmr.msra.gmra.mrb[0].mxu0 %vm30_vm3, %v13_v5  ;;  %v23_v10 = vld [vmem:[%s540_s0 + $0x58] sm:$0xff]  ;;  %v24_v12 = vld [vmem:[%s540_s0 + $0x60] sm:$0xff]  ;;  %v17_v13 = vld [vmem:[%s540_s0 + $0x28] sm:$0xff] }
   0x9   :  { %360 = vmatmul.mubr.msk.f32.vlgmr.msra.gmra.mrb[0].mxu1 %vm30_vm3, %v21_v6  ;;  %350 = vmatprep.mubr.msk.f32.mxu0 %vm30_vm3, %v14_v7  ;;  %v25_v14 = vld [vmem:[%s540_s0 + $0x68] sm:$0xff]  ;;  %v18_v15 = vld [vmem:[%s540_s0 + $0x30] sm:$0xff]  ;;  %v19_v17 = vld [vmem:[%s540_s0 + $0x38] sm:$0xff] }
   0xa   :  { %362 = vmatprep.mubr.msk.f32.mxu1 %vm30_vm3, %v22_v8  ;;  %v26_v16 = vld [vmem:[%s540_s0 + $0x70] sm:$0xff]  ;;  %v27_v18 = vld [vmem:[%s540_s0 + $0x78] sm:$0xff]  ;;  %s440_s0 = smov [#allocation2]  }
   0xb   :  { %s297_s16 = sshll.u32 %s440_s0, 4  ;;  %s298_s16 = int_to_ptr.vmem [resolvable:$true] %s297_s16 }
   0xc   :  { %351 = vmatmul.mubr.msk.f32.gmra.mrb[2].mxu0 %vm30_vm3, %v15_v9  ;;  %s415_s1 = scalar_lea.vmem %s298_s16, 2048  ;;  %p420_p1 = scmp.lt.s32.totalorder %s298_s16, %s298_s16 }
   0xd   :  { %363 = vmatmul.mubr.msk.f32.gmra.mrb[2].mxu1 %vm30_vm3, %v23_v10  ;;  %353 = vmatprep.mubr.msk.f32.mxu0 %vm30_vm3, %v16_v11  ;;  %p416_p0 = scmp.ne.s32.totalorder %s298_s16, %s415_s1  ;;  %p421_p2 = scmp.lt.s32.totalorder %s415_s1, %s415_s1 }
   0xe   :  { %365 = vmatprep.mubr.msk.f32.mxu1 %vm30_vm3, %v24_v12 }
   0xf   :  { %p422_p3 = por %p421_p2, %p420_p1 }
  0x10   :  { %354 = vmatmul.mubr.msk.f32.gmra.mrb[4].mxu0 %vm30_vm3, %v17_v13 }
  0x11   :  { %366 = vmatmul.mubr.msk.f32.gmra.mrb[4].mxu1 %vm30_vm3, %v25_v14  ;;  %356 = vmatprep.mubr.msk.f32.mxu0 %vm30_vm3, %v18_v15  ;;  %p423_p4 = pnand %p422_p3, %p416_p0 }
  0x12   :  { %368 = vmatprep.mubr.msk.f32.mxu1 %vm30_vm3, %v26_v16 }
  0x14   :  { %357 = vmatmul.mubr.msk.f32.gmra.mrb[6].mxu0 %vm30_vm3, %v19_v17 }
  0x15   :  { %369 = vmatmul.mubr.msk.f32.gmra.mrb[6].mxu1 %vm30_vm3, %v27_v18 }
  0xdb   :  { %v349_v19 = vpop.f32.mrb[0].mxu0 }
  0xdc   :  { %v361_v20 = vpop.f32.mrb[0].mxu1  ;;  %v229_v21 = vmin.f32 %v349_v19, 0.0  ;;  %v149_v23 = vpop.f32.mrb[1].mxu0 }
  0xdd   :  { %v237_v22 = vmin.f32 %v361_v20, 0.0  ;;  %v189_v24 = vpop.f32.mrb[1].mxu1  ;;  %v228_v25 = vmin.f32 %v149_v23, 0.0 }
  0xde   :  { %v236_v26 = vmin.f32 %v189_v24, 0.0  ;;  %v246_v27 = vmul.f32 1.442695, %v229_v21 }
  0xdf   :  { %v262_v28 = vmul.f32 1.442695, %v237_v22  ;;  %v244_v29 = vmul.f32 1.442695, %v228_v25  ;;  %v352_v31 = vpop.f32.mrb[2].mxu0 }
  0xe0   :  { %v260_v30 = vmul.f32 1.442695, %v236_v26  ;;  %v364_v32 = vpop.f32.mrb[2].mxu1  ;;  %383 = vpow2.f32 %v246_v27  ;;  %v231_v33 = vmin.f32 %v352_v31, 0.0  ;;  %v159_v35 = vpop.f32.mrb[3].mxu0 }
  0xe1   :  { %v239_v34 = vmin.f32 %v364_v32, 0.0  ;;  %v199_v36 = vpop.f32.mrb[3].mxu1  ;;  %385 = vpow2.f32 %v262_v28  ;;  %v230_v37 = vmin.f32 %v159_v35, 0.0 }
  0xe2   :  { %v238_v38 = vmin.f32 %v199_v36, 0.0  ;;  %387 = vpow2.f32 %v244_v29  ;;  %v250_v39 = vmul.f32 1.442695, %v231_v33 }
  0xe3   :  { %v266_v40 = vmul.f32 1.442695, %v239_v34  ;;  %389 = vpow2.f32 %v260_v30  ;;  %v248_v41 = vmul.f32 1.442695, %v230_v37  ;;  %v355_v43 = vpop.f32.mrb[4].mxu0 }
  0xe4   :  { %v264_v42 = vmul.f32 1.442695, %v238_v38  ;;  %v367_v44 = vpop.f32.mrb[4].mxu1  ;;  %391 = vpow2.f32 %v250_v39  ;;  %v233_v45 = vmin.f32 %v355_v43, 0.0  ;;  %v169_v47 = vpop.f32.mrb[5].mxu0 }
  0xe5   :  { %v241_v46 = vmin.f32 %v367_v44, 0.0  ;;  %v209_v48 = vpop.f32.mrb[5].mxu1  ;;  %393 = vpow2.f32 %v266_v40  ;;  %v232_v49 = vmin.f32 %v169_v47, 0.0 }
  0xe6   :  { %v240_v50 = vmin.f32 %v209_v48, 0.0  ;;  %395 = vpow2.f32 %v248_v41  ;;  %v254_v51 = vmul.f32 1.442695, %v233_v45 }
  0xe7   :  { %v270_v52 = vmul.f32 1.442695, %v241_v46  ;;  %397 = vpow2.f32 %v264_v42  ;;  %v252_v53 = vmul.f32 1.442695, %v232_v49  ;;  %v358_v55 = vpop.f32.mrb[6].mxu0 }
  0xe8   :  { %v268_v54 = vmul.f32 1.442695, %v240_v50  ;;  %v370_v56 = vpop.f32.mrb[6].mxu1  ;;  %399 = vpow2.f32 %v254_v51  ;;  %v235_v57 = vmin.f32 %v358_v55, 0.0  ;;  %v179_v59 = vpop.f32.mrb[7].mxu0 }
  0xe9   :  { %v243_v58 = vmin.f32 %v370_v56, 0.0  ;;  %v219_v60 = vpop.f32.mrb[7].mxu1  ;;  %401 = vpow2.f32 %v270_v52  ;;  %v234_v61 = vmin.f32 %v179_v59, 0.0 }
  0xea   :  { %v242_v62 = vmin.f32 %v219_v60, 0.0  ;;  %v384_v63 = vpop.eup %383  ;;  %403 = vpow2.f32 %v252_v53  ;;  %v258_v0 = vmul.f32 1.442695, %v235_v57 }
  0xeb   :  { %v274_v1 = vmul.f32 1.442695, %v243_v58  ;;  %v386_v2 = vpop.eup %385  ;;  %277 = vst [vmem:[#allocation2 + $0x8] sm:$0xff] %v384_v63  ;;  %405 = vpow2.f32 %v268_v54  ;;  %v256_v3 = vmul.f32 1.442695, %v234_v61 }
  0xec   :  { %v272_v4 = vmul.f32 1.442695, %v242_v62  ;;  %v388_v5 = vpop.eup %387  ;;  %285 = vst [vmem:[#allocation2 + $0x48] sm:$0xff] %v386_v2  ;;  %407 = vpow2.f32 %v258_v0 }
  0xed   :  { %v390_v6 = vpop.eup %389  ;;  %276 = vst [vmem:[#allocation2] sm:$0xff] %v388_v5  ;;  %409 = vpow2.f32 %v274_v1 }
  0xee   :  { %v392_v7 = vpop.eup %391  ;;  %284 = vst [vmem:[#allocation2 + $0x40] sm:$0xff] %v390_v6  ;;  %411 = vpow2.f32 %v256_v3 }
  0xef   :  { %v394_v8 = vpop.eup %393  ;;  %279 = vst [vmem:[#allocation2 + $0x18] sm:$0xff] %v392_v7  ;;  %413 = vpow2.f32 %v272_v4 }
  0xf0   :  { %v396_v9 = vpop.eup %395  ;;  %287 = vst [vmem:[#allocation2 + $0x58] sm:$0xff] %v394_v8 }
  0xf1   :  { %v398_v10 = vpop.eup %397  ;;  %278 = vst [vmem:[#allocation2 + $0x10] sm:$0xff] %v396_v9 }
  0xf2   :  { %v400_v11 = vpop.eup %399  ;;  %286 = vst [vmem:[#allocation2 + $0x50] sm:$0xff] %v398_v10 }
  0xf3   :  { %v402_v12 = vpop.eup %401  ;;  %281 = vst [vmem:[#allocation2 + $0x28] sm:$0xff] %v400_v11 }
  0xf4   :  { %v404_v13 = vpop.eup %403  ;;  %289 = vst [vmem:[#allocation2 + $0x68] sm:$0xff] %v402_v12 }
  0xf5   :  { %v406_v14 = vpop.eup %405  ;;  %280 = vst [vmem:[#allocation2 + $0x20] sm:$0xff] %v404_v13 }
  0xf6   :  { %v408_v15 = vpop.eup %407  ;;  %288 = vst [vmem:[#allocation2 + $0x60] sm:$0xff] %v406_v14 }
  0xf7   :  { %v410_v16 = vpop.eup %409  ;;  %283 = vst [vmem:[#allocation2 + $0x38] sm:$0xff] %v408_v15 }
  0xf8   :  { %v412_v17 = vpop.eup %411  ;;  %291 = vst [vmem:[#allocation2 + $0x78] sm:$0xff] %v410_v16 }
  0xf9   :  { %v414_v18 = vpop.eup %413  ;;  %282 = vst [vmem:[#allocation2 + $0x30] sm:$0xff] %v412_v17 }
  0xfa   :  { %290 = vst [vmem:[#allocation2 + $0x70] sm:$0xff] %v414_v18 }
  0xfb   :  { %426 = shalt.err (!%p423_p4)
}
  0xfc   :  { %s427_s19 = scalar_lea.hbm %s542_s2, 2048 }
  0xfd   :  { %p428_p5 = scmp.ne.s32.totalorder %s542_s2, %s427_s19  ;;  %p431_p6 = scmp.lt.u32.totalorder %s427_s19, %s542_s2 }
  0xff   :  { %p433_p7 = pnand %p431_p6, %p428_p5 }
 0x101   :  { %436 = shalt.err (!%p433_p7)
}
 0x102   :  { %s441_s24 = smov 128   ;;  %s442_s25 = smov 8  }
 0x103   :  { %303 = dma.vmem_to_hbm [thread:$0]  %s298_s16, 2048, %s542_s2, [#allocation3], %s441_s24, %s441_s24, %s442_s25  }
 0x104   :  { %437 = dma.done.wait [#allocation3], 2048  }
 0x105   :  { %438 = vsyncadd [#allocation3], 4294965248 }
 0x106   :  { %307 = vsyncpa [#allocation3], 1 }

</bundles_post_ra>
